<compile_context>
chip_gen: v7x
topology: tpu7x:2x2x1
jax: 0.10.0
libtpu: 0.0.40
codegen_flags: <defaults>
</compile_context>

<pallas_src>
import math

import jax
import jax.numpy as jnp
from jax.experimental import pallas as pl
from jax.experimental.pallas import tpu as pltpu

# ----------------------------- configuration --------------------------------
B = 2                # images
C = 8                # feature channels
FH = FW = 16         # feature map spatial size
IMG_H = IMG_W = 64   # image size  -> spatial_scale = 16/64 = 0.25
P = 4                # roi_align output size (P x P)
SR = 2               # roi_align sampling_ratio
R_PER_IMG = 16       # proposals per image
N_ROIS = B * R_PER_IMG
D_IN = C * P * P     # 8*4*4 = 128
HID = 128            # TwoMLPHead representation size
NUM_CLASSES = 4      # including background (class 0)

SCORE_THRESH = 0.05
DETECTIONS_PER_IMG = 5
BBOX_XFORM_CLIP = math.log(1000.0 / 16.0)
BBOX_REG_WEIGHTS = (10.0, 10.0, 5.0, 5.0)


# --------------- fused kernel: head + predictor + softmax + decode -----------
def _fused_roi_head_kernel(x_ref, w6_ref, b6_ref, w7_ref, b7_ref,
                           wcb_ref, bcb_ref, prop_ref, imhw_ref, out_ref):
    nc = NUM_CLASSES
    wx, wy, ww, wh = BBOX_REG_WEIGHTS

    # ---- XAMITwoMLPHead: x already flattened; x = relu(fc6(x)); relu(fc7(x))
    #      (Dropout2d with p=0 / eval mode is identity.)
    x = x_ref[...]
    h = jnp.dot(x, w6_ref[...], preferred_element_type=jnp.float32) + b6_ref[...]
    h = jnp.maximum(h, 0.0)
    h = jnp.dot(h, w7_ref[...], preferred_element_type=jnp.float32) + b7_ref[...]
    h = jnp.maximum(h, 0.0)

    # ---- FastRCNNPredictor: cls_score + bbox_pred packed in one matmul.
    #      Columns of z: [cls(NC) | dx(NC) | dy(NC) | dw(NC) | dh(NC)]
    z = jnp.dot(h, wcb_ref[...], preferred_element_type=jnp.float32) + bcb_ref[...]
    logits = z[:, 0 * nc:1 * nc]
    dx = z[:, 1 * nc:2 * nc] * (1.0 / wx)
    dy = z[:, 2 * nc:3 * nc] * (1.0 / wy)
    dw = jnp.minimum(z[:, 3 * nc:4 * nc] * (1.0 / ww), BBOX_XFORM_CLIP)
    dh = jnp.minimum(z[:, 4 * nc:5 * nc] * (1.0 / wh), BBOX_XFORM_CLIP)

    # ---- F.softmax(class_logits, -1) (EUP approx reciprocal for the denom)
    m = jnp.max(logits, axis=-1, keepdims=True)
    e = jnp.exp(logits - m)
    scores = e * pl.reciprocal(jnp.sum(e, axis=-1, keepdims=True), approx=True)

    # ---- BoxCoder.decode (per-class deltas applied to each proposal)
    p = prop_ref[...]
    widths = p[:, 2:3] - p[:, 0:1]
    heights = p[:, 3:4] - p[:, 1:2]
    ctr_x = p[:, 0:1] + 0.5 * widths
    ctr_y = p[:, 1:2] + 0.5 * heights

    pred_ctr_x = dx * widths + ctr_x
    pred_ctr_y = dy * heights + ctr_y
    pred_w = jnp.exp(dw) * widths
    pred_h = jnp.exp(dh) * heights

    # ---- clip_boxes_to_image (per-row image size)
    imh = imhw_ref[:, 0:1]
    imw = imhw_ref[:, 1:2]
    x1 = jnp.minimum(jnp.maximum(pred_ctr_x - 0.5 * pred_w, 0.0), imw)
    y1 = jnp.minimum(jnp.maximum(pred_ctr_y - 0.5 * pred_h, 0.0), imh)
    x2 = jnp.minimum(jnp.maximum(pred_ctr_x + 0.5 * pred_w, 0.0), imw)
    y2 = jnp.minimum(jnp.maximum(pred_ctr_y + 0.5 * pred_h, 0.0), imh)

    # single packed lane-contiguous store: [x1 | y1 | x2 | y2 | scores]
    out_ref[...] = jnp.concatenate([x1, y1, x2, y2, scores], axis=-1)


def fused_head_predict_decode(x, proposals, img_hw, params):
    """x: [N, D_IN], proposals: [N, 4], img_hw: [N, 2] (h, w). -> [N, 5*NC]."""
    n = x.shape[0]
    nc = NUM_CLASSES
    w6, b6, w7, b7, wcb, bcb = params

    tm = n                       # whole problem in one grid step (fits VMEM easily)
    grid = (pl.cdiv(n, tm),)     # == (1,)
    rep = lambda i: (0, 0)
    row = lambda i: (i, 0)

    return pl.pallas_call(
        _fused_roi_head_kernel,
        out_shape=jax.ShapeDtypeStruct((n, 5 * nc), jnp.float32),
        grid_spec=pltpu.PrefetchScalarGridSpec(
            num_scalar_prefetch=0, grid=grid,
            in_specs=[
                pl.BlockSpec((tm, D_IN), row),        # pooled features (flattened)
                pl.BlockSpec((D_IN, HID), rep),       # fc6 weight
                pl.BlockSpec((1, HID), rep),          # fc6 bias
                pl.BlockSpec((HID, HID), rep),        # fc7 weight
                pl.BlockSpec((1, HID), rep),          # fc7 bias
                pl.BlockSpec((HID, 5 * nc), rep),     # packed cls+bbox weight
                pl.BlockSpec((1, 5 * nc), rep),       # packed cls+bbox bias
                pl.BlockSpec((tm, 4), row),           # proposals
                pl.BlockSpec((tm, 2), row),           # per-row (img_h, img_w)
            ],
            out_specs=pl.BlockSpec((tm, 5 * nc), row),
        ),
        compiler_params=pltpu.CompilerParams(
            dimension_semantics=("arbitrary",)),
    )(x, w6, b6, w7, b7, wcb, bcb, proposals, img_hw)


# --------------------------- glue: RoIAlign (JAX) ----------------------------
def roi_align(feat, rois, output_size, spatial_scale, sampling_ratio):
    """feat: [C, H, W] (single image); rois: [R, 4] (x1,y1,x2,y2) image coords."""
    c, h, w = feat.shape
    p, sr = output_size, sampling_ratio
    x1 = rois[:, 0] * spatial_scale
    y1 = rois[:, 1] * spatial_scale
    x2 = rois[:, 2] * spatial_scale
    y2 = rois[:, 3] * spatial_scale
    roi_w = jnp.maximum(x2 - x1, 1.0)
    roi_h = jnp.maximum(y2 - y1, 1.0)
    bin_w = roi_w / p
    bin_h = roi_h / p

    offs = (jnp.arange(sr, dtype=jnp.float32) + 0.5) / sr            # [sr]
    grid1d = jnp.arange(p, dtype=jnp.float32)[:, None] + offs[None]  # [p, sr]
    grid1d = grid1d.reshape(-1)                                      # [p*sr]
    ys = y1[:, None] + grid1d[None, :] * bin_h[:, None]              # [R, p*sr]
    xs = x1[:, None] + grid1d[None, :] * bin_w[:, None]              # [R, p*sr]

    def one_roi(y_pts, x_pts):
        yc = jnp.clip(y_pts, 0.0, h - 1.0)
        xc = jnp.clip(x_pts, 0.0, w - 1.0)
        y0 = jnp.floor(yc).astype(jnp.int32)
        x0 = jnp.floor(xc).astype(jnp.int32)
        y1i = jnp.minimum(y0 + 1, h - 1)
        x1i = jnp.minimum(x0 + 1, w - 1)
        ly = (yc - y0)[None, :, None]
        lx = (xc - x0)[None, None, :]
        v00 = feat[:, y0[:, None], x0[None, :]]
        v01 = feat[:, y0[:, None], x1i[None, :]]
        v10 = feat[:, y1i[:, None], x0[None, :]]
        v11 = feat[:, y1i[:, None], x1i[None, :]]
        vals = (v00 * (1 - ly) * (1 - lx) + v01 * (1 - ly) * lx
                + v10 * ly * (1 - lx) + v11 * ly * lx)       # [C, p*sr, p*sr]
        return vals.reshape(c, p, sr, p, sr).mean(axis=(2, 4))  # [C, p, p]

    return jax.vmap(one_roi)(ys, xs)  # [R, C, p, p]


# ----------------------- glue: per-image detection select --------------------
def select_detections(x1, y1, x2, y2, scores):
    """x1..y2, scores: [R, NC] for one image (grouped-by-coordinate layout)."""
    nc = scores.shape[1]
    fg = slice(1, None)                                     # drop background
    x1f = x1[:, fg].reshape(-1)
    y1f = y1[:, fg].reshape(-1)
    x2f = x2[:, fg].reshape(-1)
    y2f = y2[:, fg].reshape(-1)
    sc = scores[:, fg].reshape(-1)
    labels = jnp.broadcast_to(jnp.arange(1, nc), scores[:, fg].shape).reshape(-1)
    keep = sc > SCORE_THRESH
    keep = keep & ((x2f - x1f) >= 0.01) & ((y2f - y1f) >= 0.01)  # remove_small_boxes
    masked = jnp.where(keep, sc, -1.0)
    k = min(DETECTIONS_PER_IMG, masked.shape[0])
    top_scores, top_idx = jax.lax.top_k(masked, k)
    # TODO(synk): batched_nms (class-wise IoU suppression) not implemented.
    boxes = jnp.stack([x1f[top_idx], y1f[top_idx],
                       x2f[top_idx], y2f[top_idx]], axis=-1)
    return boxes, top_scores, labels[top_idx]


# ----------------------------- full forward ----------------------------------
def xami_roi_heads_forward(features, proposals_list, image_shapes, params):
    spatial_scale = features.shape[2] / image_shapes[0][0]
    pooled = [roi_align(features[b], proposals_list[b], P, spatial_scale, SR)
              for b in range(len(proposals_list))]
    box_features = jnp.concatenate(pooled, axis=0)            # [N, C, P, P]
    x = box_features.reshape(box_features.shape[0], -1)       # flatten(start_dim=1)
    # TODO(synk): setup.add_clinical_to_roi_heads path (concat clinical_input
    # to x before fc6) is not exercised in this configuration.

    proposals_all = jnp.concatenate(proposals_list, axis=0)   # [N, 4]
    img_hw = jnp.concatenate([
        jnp.tile(jnp.array([[float(hs[0]), float(hs[1])]], jnp.float32),
                 (p.shape[0], 1))
        for p, hs in zip(proposals_list, image_shapes)], axis=0)   # [N, 2]

    packed = fused_head_predict_decode(x, proposals_all, img_hw, params)
    nc = NUM_CLASSES
    bx1 = packed[:, 0 * nc:1 * nc]
    by1 = packed[:, 1 * nc:2 * nc]
    bx2 = packed[:, 2 * nc:3 * nc]
    by2 = packed[:, 3 * nc:4 * nc]
    scores = packed[:, 4 * nc:5 * nc]

    result, start = [], 0
    for p in proposals_list:
        r = p.shape[0]
        sl = slice(start, start + r)
        b, s, l = select_detections(bx1[sl], by1[sl], bx2[sl], by2[sl], scores[sl])
        result.append({"boxes": b, "scores": s, "labels": l})
        start += r
    losses = {}  # inference path: targets=None
    return result, losses


# ---------------------------------- main --------------------------------------
if __name__ == "__main__":
    key = jax.random.PRNGKey(0)
    ks = jax.random.split(key, 12)

    # deterministic parameters (TwoMLPHead + FastRCNNPredictor shapes)
    w6 = 0.02 * jax.random.normal(ks[0], (D_IN, HID), jnp.float32)
    b6 = jnp.zeros((1, HID), jnp.float32)
    w7 = 0.02 * jax.random.normal(ks[1], (HID, HID), jnp.float32)
    b7 = jnp.zeros((1, HID), jnp.float32)
    wc = 0.02 * jax.random.normal(ks[2], (HID, NUM_CLASSES), jnp.float32)
    bc = jnp.zeros((1, NUM_CLASSES), jnp.float32)
    wb = 0.02 * jax.random.normal(ks[3], (HID, NUM_CLASSES * 4), jnp.float32)
    bb = jnp.zeros((1, NUM_CLASSES * 4), jnp.float32)

    # Pack predictor params into one (HID, 5*NC) matmul.
    # bbox_pred columns are natively interleaved per class [c0dx,c0dy,c0dw,c0dh,...];
    # regroup by coordinate so the kernel only needs contiguous lane slices.
    wb_g = wb.reshape(HID, NUM_CLASSES, 4).transpose(0, 2, 1).reshape(HID, 4 * NUM_CLASSES)
    bb_g = bb.reshape(1, NUM_CLASSES, 4).transpose(0, 2, 1).reshape(1, 4 * NUM_CLASSES)
    wcb = jnp.concatenate([wc, wb_g], axis=1)   # (HID, 5*NC) = (128, 20)
    bcb = jnp.concatenate([bc, bb_g], axis=1)   # (1, 20)
    params = (w6, b6, w7, b7, wcb, bcb)

    # deterministic inputs
    features = jax.random.normal(ks[4], (B, C, FH, FW), jnp.float32)  # NCHW
    proposals_list = []
    for i in range(B):
        k1, k2 = jax.random.split(ks[5 + i])
        xy1 = jax.random.uniform(k1, (R_PER_IMG, 2), minval=0.0, maxval=44.0)
        wh = jax.random.uniform(k2, (R_PER_IMG, 2), minval=4.0, maxval=16.0)
        proposals_list.append(
            jnp.concatenate([xy1, xy1 + wh], axis=1).astype(jnp.float32))
    image_shapes = [(IMG_H, IMG_W)] * B

    result, losses = xami_roi_heads_forward(
        features, proposals_list, image_shapes, params)
    for r in result:
        jax.block_until_ready(r["boxes"])
        jax.block_until_ready(r["scores"])
        jax.block_until_ready(r["labels"])
    print("KERNEL_OK")
</pallas_src>

<mosaic_0001>
module attributes {stable_mosaic.version = 11 : i64} {
  func.func @_fused_roi_head_kernel(%arg0: i32, %arg1: memref<32x128xf32, #tpu.memory_space<vmem>>, %arg2: memref<128x128xf32, #tpu.memory_space<vmem>>, %arg3: memref<1x128xf32, #tpu.memory_space<vmem>>, %arg4: memref<128x128xf32, #tpu.memory_space<vmem>>, %arg5: memref<1x128xf32, #tpu.memory_space<vmem>>, %arg6: memref<128x20xf32, #tpu.memory_space<vmem>>, %arg7: memref<1x20xf32, #tpu.memory_space<vmem>>, %arg8: memref<32x4xf32, #tpu.memory_space<vmem>>, %arg9: memref<32x2xf32, #tpu.memory_space<vmem>>, %arg10: memref<32x20xf32, #tpu.memory_space<vmem>>) attributes {dimension_semantics = [#tpu.dimension_semantics<arbitrary>], iteration_bounds = array<i64: 1>, scalar_prefetch = 0 : i64, scratch_operands = 0 : i64, tpu.core_type = #tpu.core_type<tc>, window_params = [{transform_indices = @transform_0, window_bounds = array<i64: 32, 128>}, {pipeline_mode = #tpu.pipeline_mode<synchronous>, transform_indices = @transform_1, window_bounds = array<i64: 128, 128>}, {pipeline_mode = #tpu.pipeline_mode<synchronous>, transform_indices = @transform_2, window_bounds = array<i64: 1, 128>}, {pipeline_mode = #tpu.pipeline_mode<synchronous>, transform_indices = @transform_3, window_bounds = array<i64: 128, 128>}, {pipeline_mode = #tpu.pipeline_mode<synchronous>, transform_indices = @transform_4, window_bounds = array<i64: 1, 128>}, {pipeline_mode = #tpu.pipeline_mode<synchronous>, transform_indices = @transform_5, window_bounds = array<i64: 128, 20>}, {pipeline_mode = #tpu.pipeline_mode<synchronous>, transform_indices = @transform_6, window_bounds = array<i64: 1, 20>}, {transform_indices = @transform_7, window_bounds = array<i64: 32, 4>}, {transform_indices = @transform_8, window_bounds = array<i64: 32, 2>}, {transform_indices = @transform_9, window_bounds = array<i64: 32, 20>}]} {
    %c0 = arith.constant 0 : index
    %c0_0 = arith.constant 0 : index
    %0 = vector.load %arg1[%c0, %c0_0] : memref<32x128xf32, #tpu.memory_space<vmem>>, vector<32x128xf32>
    %c0_1 = arith.constant 0 : index
    %c0_2 = arith.constant 0 : index
    %1 = vector.load %arg2[%c0_1, %c0_2] : memref<128x128xf32, #tpu.memory_space<vmem>>, vector<128x128xf32>
    %cst = arith.constant dense<0.000000e+00> : vector<32x128xf32>
    %2 = tpu.matmul %0, %1, %cst {dimension_numbers = #tpu.dot_dimension_numbers<[1], [0], [0], [1], [0, 0, 1, 1], [], []>} : vector<32x128xf32>, vector<128x128xf32>, vector<32x128xf32> -> vector<32x128xf32>
    %c0_3 = arith.constant 0 : index
    %c0_4 = arith.constant 0 : index
    %3 = vector.load %arg3[%c0_3, %c0_4] : memref<1x128xf32, #tpu.memory_space<vmem>>, vector<1x128xf32>
    %4 = vector.broadcast %3 : vector<1x128xf32> to vector<32x128xf32>
    %5 = arith.addf %2, %4 : vector<32x128xf32>
    %cst_5 = arith.constant 0.000000e+00 : f32
    %6 = vector.broadcast %cst_5 : f32 to vector<32x128xf32>
    %7 = arith.maximumf %5, %6 : vector<32x128xf32>
    %c0_6 = arith.constant 0 : index
    %c0_7 = arith.constant 0 : index
    %8 = vector.load %arg4[%c0_6, %c0_7] : memref<128x128xf32, #tpu.memory_space<vmem>>, vector<128x128xf32>
    %cst_8 = arith.constant dense<0.000000e+00> : vector<32x128xf32>
    %9 = tpu.matmul %7, %8, %cst_8 {dimension_numbers = #tpu.dot_dimension_numbers<[1], [0], [0], [1], [0, 0, 1, 1], [], []>} : vector<32x128xf32>, vector<128x128xf32>, vector<32x128xf32> -> vector<32x128xf32>
    %c0_9 = arith.constant 0 : index
    %c0_10 = arith.constant 0 : index
    %10 = vector.load %arg5[%c0_9, %c0_10] : memref<1x128xf32, #tpu.memory_space<vmem>>, vector<1x128xf32>
    %11 = vector.broadcast %10 : vector<1x128xf32> to vector<32x128xf32>
    %12 = arith.addf %9, %11 : vector<32x128xf32>
    %cst_11 = arith.constant 0.000000e+00 : f32
    %13 = vector.broadcast %cst_11 : f32 to vector<32x128xf32>
    %14 = arith.maximumf %12, %13 : vector<32x128xf32>
    %c0_12 = arith.constant 0 : index
    %c0_13 = arith.constant 0 : index
    %15 = vector.load %arg6[%c0_12, %c0_13] : memref<128x20xf32, #tpu.memory_space<vmem>>, vector<128x20xf32>
    %cst_14 = arith.constant dense<0.000000e+00> : vector<32x20xf32>
    %16 = tpu.matmul %14, %15, %cst_14 {dimension_numbers = #tpu.dot_dimension_numbers<[1], [0], [0], [1], [0, 0, 1, 1], [], []>} : vector<32x128xf32>, vector<128x20xf32>, vector<32x20xf32> -> vector<32x20xf32>
    %c0_15 = arith.constant 0 : index
    %c0_16 = arith.constant 0 : index
    %17 = vector.load %arg7[%c0_15, %c0_16] : memref<1x20xf32, #tpu.memory_space<vmem>>, vector<1x20xf32>
    %18 = vector.broadcast %17 : vector<1x20xf32> to vector<32x20xf32>
    %19 = arith.addf %16, %18 : vector<32x20xf32>
    %20 = vector.extract_strided_slice %19 {offsets = [0, 0], sizes = [32, 4], strides = [1, 1]} : vector<32x20xf32> to vector<32x4xf32>
    %21 = vector.extract_strided_slice %19 {offsets = [0, 4], sizes = [32, 4], strides = [1, 1]} : vector<32x20xf32> to vector<32x4xf32>
    %cst_17 = arith.constant 1.000000e-01 : f32
    %22 = vector.broadcast %cst_17 : f32 to vector<32x4xf32>
    %23 = arith.mulf %21, %22 : vector<32x4xf32>
    %24 = vector.extract_strided_slice %19 {offsets = [0, 8], sizes = [32, 4], strides = [1, 1]} : vector<32x20xf32> to vector<32x4xf32>
    %cst_18 = arith.constant 1.000000e-01 : f32
    %25 = vector.broadcast %cst_18 : f32 to vector<32x4xf32>
    %26 = arith.mulf %24, %25 : vector<32x4xf32>
    %27 = vector.extract_strided_slice %19 {offsets = [0, 12], sizes = [32, 4], strides = [1, 1]} : vector<32x20xf32> to vector<32x4xf32>
    %cst_19 = arith.constant 2.000000e-01 : f32
    %28 = vector.broadcast %cst_19 : f32 to vector<32x4xf32>
    %29 = arith.mulf %27, %28 : vector<32x4xf32>
    %cst_20 = arith.constant 4.13516665 : f32
    %30 = vector.broadcast %cst_20 : f32 to vector<32x4xf32>
    %31 = arith.minimumf %29, %30 : vector<32x4xf32>
    %32 = vector.extract_strided_slice %19 {offsets = [0, 16], sizes = [32, 4], strides = [1, 1]} : vector<32x20xf32> to vector<32x4xf32>
    %cst_21 = arith.constant 2.000000e-01 : f32
    %33 = vector.broadcast %cst_21 : f32 to vector<32x4xf32>
    %34 = arith.mulf %32, %33 : vector<32x4xf32>
    %cst_22 = arith.constant 4.13516665 : f32
    %35 = vector.broadcast %cst_22 : f32 to vector<32x4xf32>
    %36 = arith.minimumf %34, %35 : vector<32x4xf32>
    %cst_23 = arith.constant dense<0xFF800000> : vector<32xf32>
    %37 = vector.multi_reduction <maximumf>, %20, %cst_23 [1] : vector<32x4xf32> to vector<32xf32>
    %38 = vector.shape_cast %37 : vector<32xf32> to vector<32x1xf32>
    %39 = vector.broadcast %38 : vector<32x1xf32> to vector<32x4xf32>
    %40 = arith.subf %20, %39 : vector<32x4xf32>
    %41 = math.exp %40 : vector<32x4xf32>
    %cst_24 = arith.constant dense<0.000000e+00> : vector<32xf32>
    %42 = vector.multi_reduction <add>, %41, %cst_24 [1] : vector<32x4xf32> to vector<32xf32>
    %43 = vector.shape_cast %42 : vector<32xf32> to vector<32x1xf32>
    %44 = tpu.reciprocal %43 {approx = true} : vector<32x1xf32> -> vector<32x1xf32>
    %45 = vector.broadcast %44 : vector<32x1xf32> to vector<32x4xf32>
    %46 = arith.mulf %41, %45 : vector<32x4xf32>
    %c0_25 = arith.constant 0 : index
    %c0_26 = arith.constant 0 : index
    %47 = vector.load %arg8[%c0_25, %c0_26] : memref<32x4xf32, #tpu.memory_space<vmem>>, vector<32x4xf32>
    %48 = vector.extract_strided_slice %47 {offsets = [0, 2], sizes = [32, 1], strides = [1, 1]} : vector<32x4xf32> to vector<32x1xf32>
    %49 = vector.extract_strided_slice %47 {offsets = [0, 0], sizes = [32, 1], strides = [1, 1]} : vector<32x4xf32> to vector<32x1xf32>
    %50 = arith.subf %48, %49 : vector<32x1xf32>
    %51 = vector.extract_strided_slice %47 {offsets = [0, 3], sizes = [32, 1], strides = [1, 1]} : vector<32x4xf32> to vector<32x1xf32>
    %52 = vector.extract_strided_slice %47 {offsets = [0, 1], sizes = [32, 1], strides = [1, 1]} : vector<32x4xf32> to vector<32x1xf32>
    %53 = arith.subf %51, %52 : vector<32x1xf32>
    %54 = vector.extract_strided_slice %47 {offsets = [0, 0], sizes = [32, 1], strides = [1, 1]} : vector<32x4xf32> to vector<32x1xf32>
    %cst_27 = arith.constant 5.000000e-01 : f32
    %55 = vector.broadcast %cst_27 : f32 to vector<32x1xf32>
    %56 = arith.mulf %55, %50 : vector<32x1xf32>
    %57 = arith.addf %54, %56 : vector<32x1xf32>
    %58 = vector.extract_strided_slice %47 {offsets = [0, 1], sizes = [32, 1], strides = [1, 1]} : vector<32x4xf32> to vector<32x1xf32>
    %cst_28 = arith.constant 5.000000e-01 : f32
    %59 = vector.broadcast %cst_28 : f32 to vector<32x1xf32>
    %60 = arith.mulf %59, %53 : vector<32x1xf32>
    %61 = arith.addf %58, %60 : vector<32x1xf32>
    %62 = vector.broadcast %50 : vector<32x1xf32> to vector<32x4xf32>
    %63 = arith.mulf %23, %62 : vector<32x4xf32>
    %64 = vector.broadcast %57 : vector<32x1xf32> to vector<32x4xf32>
    %65 = arith.addf %63, %64 : vector<32x4xf32>
    %66 = vector.broadcast %53 : vector<32x1xf32> to vector<32x4xf32>
    %67 = arith.mulf %26, %66 : vector<32x4xf32>
    %68 = vector.broadcast %61 : vector<32x1xf32> to vector<32x4xf32>
    %69 = arith.addf %67, %68 : vector<32x4xf32>
    %70 = math.exp %31 : vector<32x4xf32>
    %71 = vector.broadcast %50 : vector<32x1xf32> to vector<32x4xf32>
    %72 = arith.mulf %70, %71 : vector<32x4xf32>
    %73 = math.exp %36 : vector<32x4xf32>
    %74 = vector.broadcast %53 : vector<32x1xf32> to vector<32x4xf32>
    %75 = arith.mulf %73, %74 : vector<32x4xf32>
    %c0_29 = arith.constant 0 : index
    %c0_30 = arith.constant 0 : index
    %76 = vector.load %arg9[%c0_29, %c0_30] : memref<32x2xf32, #tpu.memory_space<vmem>>, vector<32x1xf32>
    %c0_31 = arith.constant 0 : index
    %c1 = arith.constant 1 : index
    %77 = vector.load %arg9[%c0_31, %c1] : memref<32x2xf32, #tpu.memory_space<vmem>>, vector<32x1xf32>
    %cst_32 = arith.constant 5.000000e-01 : f32
    %78 = vector.broadcast %cst_32 : f32 to vector<32x4xf32>
    %79 = arith.mulf %78, %72 : vector<32x4xf32>
    %80 = arith.subf %65, %79 : vector<32x4xf32>
    %cst_33 = arith.constant 0.000000e+00 : f32
    %81 = vector.broadcast %cst_33 : f32 to vector<32x4xf32>
    %82 = arith.maximumf %80, %81 : vector<32x4xf32>
    %83 = vector.broadcast %77 : vector<32x1xf32> to vector<32x4xf32>
    %84 = arith.minimumf %82, %83 : vector<32x4xf32>
    %cst_34 = arith.constant 5.000000e-01 : f32
    %85 = vector.broadcast %cst_34 : f32 to vector<32x4xf32>
    %86 = arith.mulf %85, %75 : vector<32x4xf32>
    %87 = arith.subf %69, %86 : vector<32x4xf32>
    %cst_35 = arith.constant 0.000000e+00 : f32
    %88 = vector.broadcast %cst_35 : f32 to vector<32x4xf32>
    %89 = arith.maximumf %87, %88 : vector<32x4xf32>
    %90 = vector.broadcast %76 : vector<32x1xf32> to vector<32x4xf32>
    %91 = arith.minimumf %89, %90 : vector<32x4xf32>
    %cst_36 = arith.constant 5.000000e-01 : f32
    %92 = vector.broadcast %cst_36 : f32 to vector<32x4xf32>
    %93 = arith.mulf %92, %72 : vector<32x4xf32>
    %94 = arith.addf %65, %93 : vector<32x4xf32>
    %cst_37 = arith.constant 0.000000e+00 : f32
    %95 = vector.broadcast %cst_37 : f32 to vector<32x4xf32>
    %96 = arith.maximumf %94, %95 : vector<32x4xf32>
    %97 = vector.broadcast %77 : vector<32x1xf32> to vector<32x4xf32>
    %98 = arith.minimumf %96, %97 : vector<32x4xf32>
    %cst_38 = arith.constant 5.000000e-01 : f32
    %99 = vector.broadcast %cst_38 : f32 to vector<32x4xf32>
    %100 = arith.mulf %99, %75 : vector<32x4xf32>
    %101 = arith.addf %69, %100 : vector<32x4xf32>
    %cst_39 = arith.constant 0.000000e+00 : f32
    %102 = vector.broadcast %cst_39 : f32 to vector<32x4xf32>
    %103 = arith.maximumf %101, %102 : vector<32x4xf32>
    %104 = vector.broadcast %76 : vector<32x1xf32> to vector<32x4xf32>
    %105 = arith.minimumf %103, %104 : vector<32x4xf32>
    %106 = tpu.concatenate %84, %91, %98, %105, %46 in 1 : vector<32x4xf32>, vector<32x4xf32>, vector<32x4xf32>, vector<32x4xf32>, vector<32x4xf32> -> vector<32x20xf32>
    %c0_40 = arith.constant 0 : index
    %c0_41 = arith.constant 0 : index
    %107 = vector.load %arg10[%c0_40, %c0_41] : memref<32x20xf32, #tpu.memory_space<vmem>>, vector<32x20xf32>
    tpu.vector_store %arg10[%c0_40, %c0_41], %106 {strides = array<i32>} : memref<32x20xf32, #tpu.memory_space<vmem>>, vector<32x20xf32>,
    return
  }
  func.func @transform_0(%arg0: i32) -> (i32, i32) {
    %c0_i32 = arith.constant 0 : i32
    %c0_i32_0 = arith.constant 0 : i32
    return %arg0, %c0_i32 : i32, i32
  }
  func.func @transform_1(%arg0: i32) -> (i32, i32) {
    %c0_i32 = arith.constant 0 : i32
    %c0_i32_0 = arith.constant 0 : i32
    %c0_i32_1 = arith.constant 0 : i32
    return %c0_i32, %c0_i32_0 : i32, i32
  }
  func.func @transform_2(%arg0: i32) -> (i32, i32) {
    %c0_i32 = arith.constant 0 : i32
    %c0_i32_0 = arith.constant 0 : i32
    %c0_i32_1 = arith.constant 0 : i32
    return %c0_i32, %c0_i32_0 : i32, i32
  }
  func.func @transform_3(%arg0: i32) -> (i32, i32) {
    %c0_i32 = arith.constant 0 : i32
    %c0_i32_0 = arith.constant 0 : i32
    %c0_i32_1 = arith.constant 0 : i32
    return %c0_i32, %c0_i32_0 : i32, i32
  }
  func.func @transform_4(%arg0: i32) -> (i32, i32) {
    %c0_i32 = arith.constant 0 : i32
    %c0_i32_0 = arith.constant 0 : i32
    %c0_i32_1 = arith.constant 0 : i32
    return %c0_i32, %c0_i32_0 : i32, i32
  }
  func.func @transform_5(%arg0: i32) -> (i32, i32) {
    %c0_i32 = arith.constant 0 : i32
    %c0_i32_0 = arith.constant 0 : i32
    %c0_i32_1 = arith.constant 0 : i32
    return %c0_i32, %c0_i32_0 : i32, i32
  }
  func.func @transform_6(%arg0: i32) -> (i32, i32) {
    %c0_i32 = arith.constant 0 : i32
    %c0_i32_0 = arith.constant 0 : i32
    %c0_i32_1 = arith.constant 0 : i32
    return %c0_i32, %c0_i32_0 : i32, i32
  }
  func.func @transform_7(%arg0: i32) -> (i32, i32) {
    %c0_i32 = arith.constant 0 : i32
    %c0_i32_0 = arith.constant 0 : i32
    return %arg0, %c0_i32 : i32, i32
  }
  func.func @transform_8(%arg0: i32) -> (i32, i32) {
    %c0_i32 = arith.constant 0 : i32
    %c0_i32_0 = arith.constant 0 : i32
    return %arg0, %c0_i32 : i32, i32
  }
  func.func @transform_9(%arg0: i32) -> (i32, i32) {
    %c0_i32 = arith.constant 0 : i32
    %c0_i32_0 = arith.constant 0 : i32
    return %arg0, %c0_i32 : i32, i32
  }
}

</mosaic_0001>

<bundles_post_ra>
// kernel: tpu_custom_call.1
= control target key start
LH: loop header
LB: loop body
LE: loop exit
PB: predicated region body
PF: predicated region fallthrough
CT: control target
= control target key end

     0   :  { %14 = vsyncpa [#allocation3], 0  ;;  %s1188_s30 = smov [#allocation2]   ;;  %s1651_s0 = inlined_call_operand.vmem [shape: f32[32,128], index: 0, kind: input, shape index: {}]   ;;  %s1652_s1 = inlined_call_operand.vmem [shape: f32[128,128], index: 1, kind: input, shape index: {}]   ;;  %s1653_s2 = inlined_call_operand.vmem [shape: f32[1,128], index: 2, kind: input, shape index: {}]   ;;  %s1654_s3 = inlined_call_operand.hbm [shape: f32[128,128], index: 3, kind: input, shape index: {}]   ;;  %s1655_s4 = inlined_call_operand.vmem [shape: f32[1,128], index: 4, kind: input, shape index: {}]   ;;  %s1656_s5 = inlined_call_operand.vmem [shape: f32[128,20], index: 5, kind: input, shape index: {}]   ;;  %s1657_s6 = inlined_call_operand.vmem [shape: f32[1,20], index: 6, kind: input, shape index: {}]   ;;  %s1658_s7 = inlined_call_operand.vmem [shape: f32[32,4], index: 7, kind: input, shape index: {}]   ;;  %s1659_s8 = inlined_call_operand.vmem [shape: f32[32,2], index: 8, kind: input, shape index: {}]   ;;  %s1660_s9 = inlined_call_operand.vmem [shape: f32[32,20], index: 9, kind: output, shape index: {}]  }
   0x1   :  { %s26_s10 = sshll.u32 %s1188_s30, 4  ;;  %s1164_s13 = scalar_lea.hbm %s1654_s3, 2048  ;;  %s27_s10 = int_to_ptr.vmem [resolvable:$true] %s26_s10 }
   0x2   :  { %p1165_p0 = scmp.ne.s32.totalorder %s1654_s3, %s1164_s13  ;;  %p1168_p1 = scmp.lt.u32.totalorder %s1164_s13, %s1654_s3 }
   0x4   :  { %p1170_p2 = pnand %p1168_p1, %p1165_p0 }
   0x6   :  { %1173 = shalt.err (!%p1170_p2)
}
   0x7   :  { %s1174_s18 = scalar_lea.vmem %s27_s10, 2048  ;;  %p1179_p4 = scmp.lt.s32.totalorder %s27_s10, %s27_s10 }
   0x8   :  { %p1175_p3 = scmp.ne.s32.totalorder %s27_s10, %s1174_s18  ;;  %p1180_p5 = scmp.lt.s32.totalorder %s1174_s18, %s1174_s18 }
   0xa   :  { %p1181_p6 = por %p1180_p5, %p1179_p4 }
   0xc   :  { %p1182_p7 = pnand %p1181_p6, %p1175_p3 }
   0xe   :  { %1185 = shalt.err (!%p1182_p7)
}
   0xf   :  { %s1189_s19 = smov 128   ;;  %s1190_s20 = smov 8  }
  0x10   :  { %32 = dma.hbm_to_vmem [thread:$0]  %s1654_s3, 2048, %s27_s10, [#allocation3], %s1189_s19, %s1189_s19, %s1190_s20  }
  0x11   :  { %1186 = dma.done.wait [#allocation3], 2048  }
  0x12   :  { %1187 = vsyncadd [#allocation3], 4294965248  ;;  %v50_v0 = vld [vmem:[%s1652_s1] sm:$0xff]  ;;  %v51_v1 = vld [vmem:[%s1652_s1 + $0x8] sm:$0xff]  ;;  %s1191_s22 = smov 2   ;;  %v1192_v56 = vmov 1  }
  0x13   :  { %v52_v2 = vld [vmem:[%s1652_s1 + $0x10] sm:$0xff]  ;;  %v1005_v3 = vpack.c.bf16 %v51_v1, %v50_v0  ;;  %v53_v4 = vld [vmem:[%s1652_s1 + $0x18] sm:$0xff]  ;;  %v54_v6 = vld [vmem:[%s1652_s1 + $0x20] sm:$0xff]  ;;  %1130 = vset.pattern.permute.xlu1 %v1192_v56  ;;  %1131 = vset.pattern.permute.xlu0 %v1192_v56  ;;  %v1193_v61 = vmov 2   ;;  %vm394_vm0 = vcmask 31744   ;;  %s1199_s20 = smov 4  }
  0x14   :  { %v1009_v5 = vpack.c.bf16 %v53_v4, %v52_v2  ;;  %v55_v7 = vld [vmem:[%s1652_s1 + $0x28] sm:$0xff]  ;;  %v46_v9 = vld [vmem:[%s1651_s0] sm:$0xff]  ;;  %v56_v10 = vld [vmem:[%s1652_s1 + $0x30] sm:$0xff]  ;;  %s1200_s21 = smov 16   ;;  %vm803_vm1 = vcmask 64512   ;;  %vm808_vm2 = vcmask 97280  }
  0x15   :  { %1006 = vmatprep.subr.bf16.mxu0 %v1005_v3  ;;  %v1013_v8 = vpack.c.bf16 %v55_v7, %v54_v6  ;;  %v57_v11 = vld [vmem:[%s1652_s1 + $0x38] sm:$0xff]  ;;  %923 = vmatprep.mubr.f32.mxu0 %v46_v9  ;;  %v162_v12 = vld [vmem:[#allocation2] sm:$0xff]  ;;  %v163_v13 = vld [vmem:[#allocation2 + $0x8] sm:$0xff]  ;;  %vm813_vm3 = vcmask 130048   ;;  %vm818_vm4 = vcmask 162816  }
  0x16   :  { %1008 = vmatpush3.bf16.msra.mxu0 %v1005_v3  ;;  %v164_v14 = vld [vmem:[#allocation2 + $0x10] sm:$0xff]  ;;  %v165_v15 = vld [vmem:[#allocation2 + $0x18] sm:$0xff]  ;;  %v1037_v16 = vpack.c.bf16 %v163_v13, %v162_v12  ;;  %v1017_v18 = vpack.c.bf16 %v57_v11, %v56_v10  ;;  %v166_v19 = vld [vmem:[#allocation2 + $0x20] sm:$0xff] }
  0x17   :  { %1010 = vmatprep.subr.bf16.mxu0 %v1009_v5  ;;  %v1041_v17 = vpack.c.bf16 %v165_v15, %v164_v14  ;;  %v167_v20 = vld [vmem:[#allocation2 + $0x28] sm:$0xff]  ;;  %v58_v21 = vld [vmem:[%s1652_s1 + $0x40] sm:$0xff]  ;;  %v168_v25 = vld [vmem:[#allocation2 + $0x30] sm:$0xff] }
  0x18   :  { %v59_v22 = vld [vmem:[%s1652_s1 + $0x48] sm:$0xff]  ;;  %1038 = vmatprep.subr.bf16.mxu1 %v1037_v16  ;;  %v1045_v23 = vpack.c.bf16 %v167_v20, %v166_v19  ;;  %v169_v26 = vld [vmem:[#allocation2 + $0x38] sm:$0xff]  ;;  %v60_v27 = vld [vmem:[%s1652_s1 + $0x50] sm:$0xff] }
  0x19   :  { %1040 = vmatpush3.bf16.msra.mxu1 %v1037_v16  ;;  %v1021_v24 = vpack.c.bf16 %v59_v22, %v58_v21  ;;  %v61_v28 = vld [vmem:[%s1652_s1 + $0x58] sm:$0xff]  ;;  %v1049_v29 = vpack.c.bf16 %v169_v26, %v168_v25  ;;  %v170_v31 = vld [vmem:[#allocation2 + $0x40] sm:$0xff]  ;;  %v171_v32 = vld [vmem:[#allocation2 + $0x48] sm:$0xff] }
  0x1a   :  { %1012 = vmatpush3.bf16.msra.mxu0 %v1009_v5  ;;  %1042 = vmatprep.subr.bf16.mxu1 %v1041_v17  ;;  %v1025_v30 = vpack.c.bf16 %v61_v28, %v60_v27  ;;  %v62_v33 = vld [vmem:[%s1652_s1 + $0x60] sm:$0xff]  ;;  %v63_v34 = vld [vmem:[%s1652_s1 + $0x68] sm:$0xff]  ;;  %v1053_v35 = vpack.c.bf16 %v171_v32, %v170_v31  ;;  %v172_v37 = vld [vmem:[#allocation2 + $0x50] sm:$0xff] }
  0x1b   :  { %1014 = vmatprep.subr.bf16.mxu0 %v1013_v8  ;;  %v1029_v36 = vpack.c.bf16 %v63_v34, %v62_v33  ;;  %v173_v38 = vld [vmem:[#allocation2 + $0x58] sm:$0xff]  ;;  %v64_v39 = vld [vmem:[%s1652_s1 + $0x70] sm:$0xff]  ;;  %v174_v43 = vld [vmem:[#allocation2 + $0x60] sm:$0xff] }
  0x1c   :  { %v65_v40 = vld [vmem:[%s1652_s1 + $0x78] sm:$0xff]  ;;  %v1057_v41 = vpack.c.bf16 %v173_v38, %v172_v37  ;;  %v175_v44 = vld [vmem:[#allocation2 + $0x68] sm:$0xff]  ;;  %v48_v47 = vld [vmem:[%s1651_s0 + $0x10] sm:$0xff] }
  0x1d   :  { %1044 = vmatpush3.bf16.msra.mxu1 %v1041_v17  ;;  %v1033_v42 = vpack.c.bf16 %v65_v40, %v64_v39  ;;  %v1061_v45 = vpack.c.bf16 %v175_v44, %v174_v43  ;;  %v47_v46 = vld [vmem:[%s1651_s0 + $0x8] sm:$0xff]  ;;  %v49_v48 = vld [vmem:[%s1651_s0 + $0x18] sm:$0xff]  ;;  %v176_v49 = vld [vmem:[#allocation2 + $0x70] sm:$0xff]  ;;  %v1194_v40 = vmov 3  }
  0x1e   :  { %1016 = vmatpush3.bf16.msra.mxu0 %v1013_v8  ;;  %1046 = vmatprep.subr.bf16.mxu1 %v1045_v23  ;;  %v177_v50 = vld [vmem:[#allocation2 + $0x78] sm:$0xff]  ;;  %v1326_v52 = vld [vmem:[%s1658_s7] sm:$0xff]  ;;  %v1331_v53 = vld [vmem:[%s1658_s7 + $0x10] sm:$0xff] }
  0x1f   :  { %1018 = vmatprep.subr.bf16.mxu0 %v1017_v18  ;;  %v1065_v51 = vpack.c.bf16 %v177_v50, %v176_v49  ;;  %447 = vrot.lane.b32.xlu0 %v1326_v52, %s1191_s22  ;;  %v1338_v54 = vld [vmem:[%s1658_s7 + $0x8] sm:$0xff]  ;;  %v1343_v55 = vld [vmem:[%s1658_s7 + $0x18] sm:$0xff]  ;;  %v1352_v57 = vld [vmem:[%s1659_s8] sm:$0xff] }
  0x20   :  { %451 = vrot.lane.b32.xlu1 %v1331_v53, %s1191_s22  ;;  %v1358_v58 = vld [vmem:[%s1659_s8 + $0x8] sm:$0xff]  ;;  %v1363_v59 = vld [vmem:[%s1659_s8 + $0x10] sm:$0xff]  ;;  %v1370_v60 = vld [vmem:[%s1659_s8 + $0x18] sm:$0xff] }
  0x21   :  { %1048 = vmatpush3.bf16.msra.mxu1 %v1045_v23  ;;  %v274_v62 = vld [vmem:[%s1656_s5] sm:$0xff]  ;;  %v275_v63 = vld [vmem:[%s1656_s5 + $0x8] sm:$0xff]  ;;  %v276_v0 = vld [vmem:[%s1656_s5 + $0x10] sm:$0xff] }
  0x22   :  { %1020 = vmatpush3.bf16.msra.mxu0 %v1017_v18  ;;  %1050 = vmatprep.subr.bf16.mxu1 %v1049_v29  ;;  %v1069_v1 = vpack.c.bf16 %v275_v63, %v274_v62  ;;  %v277_v2 = vld [vmem:[%s1656_s5 + $0x18] sm:$0xff]  ;;  %v278_v4 = vld [vmem:[%s1656_s5 + $0x20] sm:$0xff]  ;;  %v279_v5 = vld [vmem:[%s1656_s5 + $0x28] sm:$0xff] }
  0x23   :  { %1022 = vmatprep.subr.bf16.mxu0 %v1021_v24  ;;  %449 = vrot.lane.b32.xlu0 %v1338_v54, %s1191_s22  ;;  %v1385_v3 = vpack.c.bf16 %v277_v2, %v276_v0  ;;  %v1394_v6 = vpack.c.bf16 %v279_v5, %v278_v4  ;;  %v280_v7 = vld [vmem:[%s1656_s5 + $0x30] sm:$0xff]  ;;  %v281_v8 = vld [vmem:[%s1656_s5 + $0x38] sm:$0xff]  ;;  %v282_v10 = vld [vmem:[%s1656_s5 + $0x40] sm:$0xff] }
  0x24   :  { %453 = vrot.lane.b32.xlu1 %v1343_v55, %s1191_s22  ;;  %v1081_v9 = vpack.c.bf16 %v281_v8, %v280_v7  ;;  %v283_v11 = vld [vmem:[%s1656_s5 + $0x48] sm:$0xff]  ;;  %v284_v13 = vld [vmem:[%s1656_s5 + $0x50] sm:$0xff]  ;;  %v285_v14 = vld [vmem:[%s1656_s5 + $0x58] sm:$0xff] }
  0x25   :  { %1052 = vmatpush3.bf16.msra.mxu1 %v1049_v29  ;;  %v1085_v12 = vpack.c.bf16 %v283_v11, %v282_v10  ;;  %v1089_v15 = vpack.c.bf16 %v285_v14, %v284_v13  ;;  %v286_v16 = vld [vmem:[%s1656_s5 + $0x60] sm:$0xff]  ;;  %v287_v17 = vld [vmem:[%s1656_s5 + $0x68] sm:$0xff] }
  0x26   :  { %1024 = vmatpush3.bf16.msra.mxu0 %v1021_v24  ;;  %1054 = vmatprep.subr.bf16.mxu1 %v1053_v35  ;;  %v1093_v18 = vpack.c.bf16 %v287_v17, %v286_v16  ;;  %v828_v19 = vld [vmem:[%s1653_s2] ss:$0 sm:$0xff]  ;;  %s1195_s2 = smov 126  }
  0x27   :  { %1026 = vmatprep.subr.bf16.mxu0 %v1025_v30  ;;  %635 = vperm.xlu0 %1131, %v1363_v59  }
  0x28   :  { %625 = vperm.xlu1 %1130, %v1352_v57  }
  0x29   :  { %1056 = vmatpush3.bf16.msra.mxu1 %v1053_v35 }
  0x2a   :  { %1028 = vmatpush3.bf16.msra.mxu0 %v1025_v30  ;;  %1058 = vmatprep.subr.bf16.mxu1 %v1057_v41 }
  0x2b   :  { %1030 = vmatprep.subr.bf16.mxu0 %v1029_v36  ;;  %1132 = vset.pattern.permute.xlu0 %v1193_v61 }
  0x2c   :  { %630 = vperm.xlu1 %1130, %v1358_v58  }
  0x2d   :  { %1060 = vmatpush3.bf16.msra.mxu1 %v1057_v41 }
  0x2e   :  { %1032 = vmatpush3.bf16.msra.mxu0 %v1029_v36  ;;  %1062 = vmatprep.subr.bf16.mxu1 %v1061_v45 }
  0x2f   :  { %1034 = vmatprep.subr.bf16.mxu0 %v1033_v42 }
  0x30   :  { %640 = vperm.xlu1 %1130, %v1370_v60  }
  0x31   :  { %1064 = vmatpush3.bf16.msra.mxu1 %v1061_v45  ;;  %v288_v45 = vld [vmem:[%s1656_s5 + $0x70] sm:$0xff] }
  0x32   :  { %1036 = vmatpush3.bf16.msra.mxu0 %v1033_v42  ;;  %1066 = vmatprep.subr.bf16.mxu1 %v1065_v51 }
  0x33   :  { %1070 = vmatprep.subr.bf16.mxu0 %v1069_v1 }
  0x34   :  { %1133 = vset.pattern.permute.xlu1 %v1193_v61 }
  0x35   :  { %924 = vmatmul.mubr.f32.vlgmr.msra.gmra.mrb[0].mxu0 %v47_v46  ;;  %1068 = vmatpush3.bf16.msra.mxu1 %v1065_v51  ;;  %v289_v46 = vld [vmem:[%s1656_s5 + $0x78] sm:$0xff] }
  0x36   :  { %926 = vmatprep.mubr.f32.mxu0 %v48_v47  ;;  %1101 = vmatprep.subr.bf16.mxu1 %v1069_v1  ;;  %v1097_v47 = vpack.c.bf16 %v289_v46, %v288_v45 }
  0x37   :  { %1072 = vmatpush3.bf16.msra.mxu0 %v1069_v1 }
  0x38   :  { %1074 = vmatprep.subr.bf16.mxu0 %v1385_v3 }
  0x39   :  { %927 = vmatmul.mubr.f32.gmra.mrb[2].mxu0 %v49_v48  ;;  %v1196_v48 = vmov 0  }
  0x3b   :  { %1076 = vmatpush3.bf16.msra.mxu0 %v1385_v3 }
  0x3c   :  { %1078 = vmatprep.subr.bf16.mxu0 %v1394_v6 }
  0x3f   :  { %1080 = vmatpush3.bf16.msra.mxu0 %v1394_v6 }
  0x40   :  { %1082 = vmatprep.subr.bf16.mxu0 %v1081_v9 }
  0x43   :  { %1084 = vmatpush3.bf16.msra.mxu0 %v1081_v9 }
  0x44   :  { %1086 = vmatprep.subr.bf16.mxu0 %v1085_v12 }
  0x47   :  { %1088 = vmatpush3.bf16.msra.mxu0 %v1085_v12 }
  0x48   :  { %1090 = vmatprep.subr.bf16.mxu0 %v1089_v15 }
  0x4b   :  { %1092 = vmatpush3.bf16.msra.mxu0 %v1089_v15 }
  0x4c   :  { %1094 = vmatprep.subr.bf16.mxu0 %v1093_v18 }
  0x4f   :  { %1096 = vmatpush3.bf16.msra.mxu0 %v1093_v18 }
  0x50   :  { %1098 = vmatprep.subr.bf16.mxu0 %v1097_v47 }
  0x53   :  { %1100 = vmatpush3.bf16.msra.mxu0 %v1097_v47 }
  0x91   :  { %v448_v20 = vpop.permute.xlu0 %447 }
  0x92   :  { %v452_v21 = vpop.permute.xlu1 %451  ;;  %v459_v22 = vsub.f32 %v1326_v52, %v448_v20 }
  0x93   :  { %v461_v36 = vsub.f32 %v1331_v53, %v452_v21 }
  0x94   :  { %489 = vperm.xlu0 %1132, %v459_v22   ;;  %v463_v42 = vmul.f32 0.5, %v459_v22 }
  0x95   :  { %v450_v27 = vpop.permute.xlu0 %449  ;;  %v465_v43 = vmul.f32 0.5, %v461_v36 }
  0x96   :  { %v454_v28 = vpop.permute.xlu1 %453  ;;  %v460_v29 = vsub.f32 %v1338_v54, %v450_v27 }
  0x97   :  { %v462_v30 = vsub.f32 %v1343_v55, %v454_v28 }
  0x98   :  { %494 = vperm.xlu1 %1133, %v460_v29   ;;  %v464_v41 = vmul.f32 0.5, %v460_v29 }
  0x99   :  { %504 = vperm.xlu0 %1132, %v462_v30   ;;  %v466_v44 = vmul.f32 0.5, %v462_v30 }
  0x9c   :  { %499 = vperm.xlu1 %1133, %v461_v36  }
  0x9d   :  { %1135 = vset.pattern.permute.xlu0 %v1194_v40 }
  0x9e   :  { %540 = vperm.xlu0 %1135, %v460_v29  }
  0xa0   :  { %1134 = vset.pattern.permute.xlu1 %v1194_v40 }
  0xa1   :  { %536 = vperm.xlu1 %1134, %v459_v22   ;;  %v830_v22 = vld [vmem:[%s1657_s6] ss:$0 sm:$0xff]  ;;  %s1198_s6 = smov 124  }
  0xa2   :  { %473 = vrot.lane.b32.xlu0 %v464_v41, %s1195_s2 }
  0xa3   :  { %1137 = vset.pattern.permute.xlu0 %v1196_v48 }
  0xa5   :  { %544 = vperm.xlu1 %1134, %v461_v36  }
  0xa6   :  { %v1444_v51 = vpop.permute.xlu0 %635 }
  0xa7   :  { %v1440_v49 = vpop.permute.xlu1 %625 }
  0xa9   :  { %548 = vperm.xlu1 %1134, %v462_v30  }
  0xab   :  { %v1442_v50 = vpop.permute.xlu1 %630 }
  0xad   :  { %471 = vrot.lane.b32.xlu1 %v463_v42, %s1195_s2 }
  0xae   :  { %1136 = vset.pattern.permute.xlu1 %v1196_v48 }
  0xaf   :  { %v1446_v61 = vpop.permute.xlu1 %640 }
  0xb1   :  { %475 = vrot.lane.b32.xlu1 %v465_v43, %s1195_s2 }
  0xb5   :  { %477 = vrot.lane.b32.xlu1 %v466_v44, %s1195_s2 }
 0x108   :  { %v925_v23 = vpop.f32.mrb[0].mxu0 }
 0x109   :  { %v145_v24 = vadd.f32 %v925_v23, %v828_v19  ;;  %v139_v25 = vpop.f32.mrb[1].mxu0 }
 0x10a   :  { %v140_v26 = vadd.f32 %v828_v19, %v139_v25 }
 0x10b   :  { %v159_v33 = vmax.f32 %v145_v24, 0.0 }
 0x10c   :  { %v928_v31 = vpop.f32.mrb[2].mxu0  ;;  %v158_v32 = vmax.f32 %v140_v26, 0.0 }
 0x10d   :  { %v155_v34 = vadd.f32 %v928_v31, %v828_v19  ;;  %v149_v35 = vpop.f32.mrb[3].mxu0 }
 0x10e   :  { %v150_v37 = vadd.f32 %v828_v19, %v149_v35  ;;  %961 = vmatprep.mubr.f32.mxu1 %v158_v32 }
 0x10f   :  { %v161_v38 = vmax.f32 %v155_v34, 0.0  ;;  %962 = vmatmul.mubr.f32.vlgmr.msra.gmra.mrb[0].mxu1 %v159_v33 }
 0x110   :  { %v160_v39 = vmax.f32 %v150_v37, 0.0  ;;  %1109 = vmatpush3.bf16.msra.mxu1 %v1069_v1 }
 0x111   :  { %1102 = vmatprep.subr.bf16.mxu1 %v1385_v3 }
 0x112   :  { %964 = vmatprep.mubr.f32.mxu1 %v160_v39 }
 0x113   :  { %965 = vmatmul.mubr.f32.gmra.mrb[2].mxu1 %v161_v38  ;;  %v1448_v62 = vpop.permute.xlu0 %489 }
 0x114   :  { %1110 = vmatpush3.bf16.msra.mxu1 %v1385_v3 }
 0x115   :  { %1103 = vmatprep.subr.bf16.mxu1 %v1394_v6 }
 0x117   :  { %v1450_v63 = vpop.permute.xlu1 %494 }
 0x118   :  { %1111 = vmatpush3.bf16.msra.mxu1 %v1394_v6  ;;  %v1452_v0 = vpop.permute.xlu0 %504 }
 0x119   :  { %1104 = vmatprep.subr.bf16.mxu1 %v1081_v9 }
 0x11b   :  { %v1454_v1 = vpop.permute.xlu1 %499 }
 0x11c   :  { %1112 = vmatpush3.bf16.msra.mxu1 %v1081_v9 }
 0x11d   :  { %1105 = vmatprep.subr.bf16.mxu1 %v1085_v12  ;;  %v1456_v2 = vpop.permute.xlu0 %540 }
 0x120   :  { %1113 = vmatpush3.bf16.msra.mxu1 %v1085_v12  ;;  %v1458_v3 = vpop.permute.xlu1 %536 }
 0x121   :  { %1106 = vmatprep.subr.bf16.mxu1 %v1089_v15  ;;  %v474_v4 = vpop.permute.xlu0 %473 }
 0x122   :  { %v484_v5 = vadd.f32 %v474_v4, %v1338_v54 }
 0x124   :  { %1114 = vmatpush3.bf16.msra.mxu1 %v1089_v15  ;;  %518 = vperm.xlu0 %1137, %v484_v5   ;;  %v1461_v6 = vpop.permute.xlu1 %544 }
 0x125   :  { %1107 = vmatprep.subr.bf16.mxu1 %v1093_v18 }
 0x128   :  { %1115 = vmatpush3.bf16.msra.mxu1 %v1093_v18  ;;  %v1463_v7 = vpop.permute.xlu1 %548 }
 0x129   :  { %1108 = vmatprep.subr.bf16.mxu1 %v1097_v47 }
 0x12c   :  { %1116 = vmatpush3.bf16.msra.mxu1 %v1097_v47  ;;  %v472_v8 = vpop.permute.xlu1 %471 }
 0x12d   :  { %v483_v9 = vadd.f32 %v472_v8, %v1326_v52  ;;  %v829_v52 = vld [vmem:[%s1655_s4] ss:$0 sm:$0xff]  ;;  %s1197_s4 = smov 120  }
 0x12f   :  { %513 = vperm.xlu1 %1136, %v483_v9  }
 0x130   :  { %v476_v10 = vpop.permute.xlu1 %475 }
 0x131   :  { %v485_v11 = vadd.f32 %v476_v10, %v1331_v53 }
 0x133   :  { %523 = vperm.xlu1 %1136, %v485_v11  }
 0x134   :  { %v478_v12 = vpop.permute.xlu1 %477 }
 0x135   :  { %v486_v13 = vadd.f32 %v478_v12, %v1343_v55 }
 0x137   :  { %528 = vperm.xlu1 %1136, %v486_v13  }
 0x13b   :  { %1138 = vset.pattern.permute.xlu1 %v1192_v56 }
 0x13c   :  { %556 = vperm.xlu1 %1138, %v483_v9  }
 0x140   :  { %560 = vperm.xlu1 %1138, %v484_v5  }
 0x144   :  { %564 = vperm.xlu1 %1138, %v485_v11  }
 0x148   :  { %568 = vperm.xlu1 %1138, %v486_v13  }
 0x14c   :  { %1139 = vset.pattern.permute.xlu1 %v1196_v48 }
 0x1e2   :  { %v963_v54 = vpop.f32.mrb[0].mxu1 }
 0x1e3   :  { %v257_v14 = vadd.f32 %v963_v54, %v829_v52  ;;  %v251_v15 = vpop.f32.mrb[1].mxu1 }
 0x1e4   :  { %v252_v53 = vadd.f32 %v829_v52, %v251_v15 }
 0x1e5   :  { %v271_v18 = vmax.f32 %v257_v14, 0.0 }
 0x1e6   :  { %v270_v16 = vmax.f32 %v252_v53, 0.0  ;;  %v966_v17 = vpop.f32.mrb[2].mxu1 }
 0x1e7   :  { %v267_v55 = vadd.f32 %v966_v17, %v829_v52  ;;  %v261_v19 = vpop.f32.mrb[3].mxu1 }
 0x1e8   :  { %v262_v20 = vadd.f32 %v829_v52, %v261_v19  ;;  %999 = vmatprep.mubr.f32.mxu0 %v270_v16  ;;  %v519_v19 = vpop.permute.xlu0 %518 }
 0x1e9   :  { %1000 = vmatmul.mubr.f32.vlgmr.msra.gmra.mrb[4].mxu0 %v271_v18  ;;  %v273_v21 = vmax.f32 %v267_v55, 0.0 }
 0x1ea   :  { %v272_v56 = vmax.f32 %v262_v20, 0.0 }
 0x1ec   :  { %1002 = vmatprep.mubr.f32.mxu1 %v272_v56 }
 0x1ed   :  { %1003 = vmatmul.mubr.f32.vlgmr.msra.gmra.mrb[4].mxu1 %v273_v21 }
 0x2bc   :  { %v1001_v23 = vpop.f32.mrb[4].mxu0 }
 0x2bd   :  { %v1475_v24 = vadd.f32 %v1001_v23, %v830_v22  ;;  %v363_v25 = vpop.f32.mrb[5].mxu0 }
 0x2be   :  { %v1477_v26 = vadd.f32 %v830_v22, %v363_v25 }
 0x2bf   :  { %v387_v27 = vmul.f32 0.2, %v1475_v24  ;;  %v398_v28 = vsel %vm394_vm0, %v1475_v24, -inf }
 0x2c0   :  { %v1004_v29 = vpop.f32.mrb[4].mxu1  ;;  %399 = vmax.xlane.f32.xlu1 %v398_v28  ;;  %v395_v30 = vsel %vm394_vm0, %v1477_v26, -inf  ;;  %v386_v34 = vmul.f32 0.2, %v1477_v26 }
 0x2c1   :  { %v1484_v31 = vadd.f32 %v1004_v29, %v830_v22  ;;  %v373_v32 = vpop.f32.mrb[5].mxu1  ;;  %396 = vmax.xlane.f32.xlu0 %v395_v30  ;;  %v391_v33 = vmin.f32 %v387_v27, 4.1351666  ;;  %v383_v29 = vmul.f32 0.1, %v1475_v24 }
 0x2c2   :  { %v1487_v35 = vadd.f32 %v830_v22, %v373_v32  ;;  %v390_v39 = vmin.f32 %v386_v34, 4.1351666 }
 0x2c3   :  { %v404_v36 = vsel %vm394_vm0, %v1484_v31, -inf  ;;  %v577_v37 = vmul.f32 1.442695, %v391_v33  ;;  %v389_v38 = vmul.f32 0.2, %v1484_v31 }
 0x2c4   :  { %v401_v40 = vsel %vm394_vm0, %v1487_v35, -inf  ;;  %v575_v42 = vmul.f32 1.442695, %v390_v39  ;;  %v388_v43 = vmul.f32 0.2, %v1487_v35 }
 0x2c5   :  { %405 = vmax.xlane.f32.xlu0 %v404_v36  ;;  %1140 = vpow2.f32 %v577_v37  ;;  %v393_v41 = vmin.f32 %v389_v38, 4.1351666  ;;  %v508_v36 = vmul.f32 %v1450_v63, %v383_v29 }
 0x2c6   :  { %1142 = vpow2.f32 %v575_v42  ;;  %v392_v45 = vmin.f32 %v388_v43, 4.1351666 }
 0x2c7   :  { %v581_v44 = vmul.f32 1.442695, %v393_v41  ;;  %v532_v42 = vadd.f32 %v519_v19, %v508_v36 }
 0x2c8   :  { %v579_v47 = vmul.f32 1.442695, %v392_v45 }
 0x2c9   :  { %402 = vmax.xlane.f32.xlu0 %v401_v40  ;;  %1144 = vpow2.f32 %v581_v44  ;;  %v382_v40 = vmul.f32 0.1, %v1477_v26 }
 0x2ca   :  { %1146 = vpow2.f32 %v579_v47 }
 0x2cf   :  { %v1141_v46 = vpop.eup %1140 }
 0x2d0   :  { %v584_v48 = vmul.f32 %v1141_v46, %v1450_v63  ;;  %v1143_v4 = vpop.eup %1142  ;;  %v588_v8 = vmul.f32 %v1141_v46, %v1456_v2 }
 0x2d1   :  { %676 = vperm.xlu1 %1139, %v1352_v57   ;;  %v583_v57 = vmul.f32 %v1143_v4, %v1448_v62  ;;  %v587_v11 = vmul.f32 %v1143_v4, %v1458_v3 }
 0x2d2   :  { %v596_v5 = vmul.f32 0.5, %v584_v48  ;;  %v648_v10 = vmul.f32 0.5, %v588_v8 }
 0x2d3   :  { %v1500_v9 = vpop.eup %1144  ;;  %v647_v52 = vmul.f32 0.5, %v587_v11 }
 0x2d4   :  { %v1509_v12 = vpop.eup %1146  ;;  %v590_v19 = vmul.f32 %v1500_v9, %v1463_v7 }
 0x2d5   :  { %684 = vperm.xlu1 %1139, %v1363_v59   ;;  %v586_v59 = vmul.f32 %v1500_v9, %v1452_v0  ;;  %v585_v54 = vmul.f32 %v1509_v12, %v1454_v1  ;;  %v589_v36 = vmul.f32 %v1509_v12, %v1461_v6 }
 0x2d7   :  { %v598_v13 = vmul.f32 0.5, %v586_v59  ;;  %v597_v14 = vmul.f32 0.5, %v585_v54 }
 0x2d9   :  { %688 = vperm.xlu1 %1139, %v1370_v60   ;;  %v595_v60 = vmul.f32 0.5, %v583_v57  ;;  %v551_v57 = vmul.f32 %v1458_v3, %v382_v40 }
 0x2dd   :  { %605 = vrot.lane.b32.xlu1 %v596_v5, %s1197_s4 }
 0x2df   :  { %680 = vperm.xlu0 %1137, %v1358_v58   ;;  %v514_v58 = vpop.permute.xlu1 %513 }
 0x2e1   :  { %657 = vrot.lane.b32.xlu1 %v648_v10, %s1197_s4  ;;  %v385_v10 = vmul.f32 0.1, %v1484_v31 }
 0x2e3   :  { %603 = vrot.lane.b32.xlu0 %v595_v60, %s1197_s4  ;;  %v1517_v15 = vpop.permute.xlu1 %523  ;;  %v510_v54 = vmul.f32 %v1452_v0, %v385_v10 }
 0x2e5   :  { %609 = vrot.lane.b32.xlu1 %v598_v13, %s1197_s4 }
 0x2e7   :  { %655 = vrot.lane.b32.xlu0 %v647_v52, %s1197_s4  ;;  %v1519_v53 = vpop.permute.xlu1 %528 }
 0x2eb   :  { %607 = vrot.lane.b32.xlu0 %v597_v14, %s1197_s4  ;;  %v557_v16 = vpop.permute.xlu1 %556 }
 0x2ec   :  { %v571_v52 = vadd.f32 %v557_v16, %v551_v57 }
 0x2ef   :  { %v561_v17 = vpop.permute.xlu1 %560 }
 0x2f3   :  { %v1521_v18 = vpop.permute.xlu1 %564 }
 0x2f7   :  { %v1523_v55 = vpop.permute.xlu1 %568 }
 0x34d   :  { %v400_v20 = vpop.xlane.xlu1 %399 }
 0x34e   :  { %v408_v56 = vsub.f32 %v1475_v24, %v400_v20  ;;  %v397_v21 = vpop.xlane.xlu0 %396  ;;  %v552_v24 = vmul.f32 %v1456_v2, %v383_v29 }
 0x34f   :  { %v407_v22 = vsub.f32 %v1477_v26, %v397_v21  ;;  %v507_v26 = vmul.f32 %v1448_v62, %v382_v40  ;;  %v534_v21 = vadd.f32 %v1519_v53, %v510_v54 }
 0x350   :  { %v413_v23 = vmul.f32 1.442695, %v408_v56  ;;  %v572_v48 = vadd.f32 %v561_v17, %v552_v24 }
 0x351   :  { %v411_v25 = vmul.f32 1.442695, %v407_v22  ;;  %v1527_v27 = vpop.permute.xlu1 %676  ;;  %v531_v8 = vadd.f32 %v514_v58, %v507_v26  ;;  %v554_v26 = vmul.f32 %v1463_v7, %v385_v10 }
 0x352   :  { %1148 = vpow2.f32 %v413_v23  ;;  %v406_v28 = vpop.xlane.xlu0 %405  ;;  %v650_v23 = vmul.f32 0.5, %v590_v19 }
 0x353   :  { %1150 = vpow2.f32 %v411_v25  ;;  %v410_v30 = vsub.f32 %v1484_v31, %v406_v28 }
 0x355   :  { %v1531_v32 = vpop.permute.xlu1 %684  ;;  %v417_v33 = vmul.f32 1.442695, %v410_v30  ;;  %v384_v30 = vmul.f32 0.1, %v1487_v35 }
 0x356   :  { %v403_v34 = vpop.xlane.xlu0 %402 }
 0x357   :  { %1152 = vpow2.f32 %v417_v33  ;;  %v409_v37 = vsub.f32 %v1487_v35, %v403_v34  ;;  %v509_v33 = vmul.f32 %v1454_v1, %v384_v30 }
 0x359   :  { %v1535_v38 = vpop.permute.xlu1 %688  ;;  %v415_v39 = vmul.f32 1.442695, %v409_v37  ;;  %v533_v40 = vadd.f32 %v1517_v15, %v509_v33 }
 0x35b   :  { %1154 = vpow2.f32 %v415_v39 }
 0x35c   :  { %v1538_v41 = vpop.eup %1148 }
 0x35d   :  { %v1541_v43 = vpop.eup %1150  ;;  %v606_v44 = vpop.permute.xlu1 %605  ;;  %v422_v63 = vsel %vm394_vm0, %v1538_v41, 0.0 }
 0x35e   :  { %v1545_v45 = vadd.f32 %v606_v44, %v532_v42  ;;  %423 = vadd.xlane.f32.xlu1 %v422_v63  ;;  %v419_v46 = vsel %vm394_vm0, %v1541_v43, 0.0  ;;  %v681_v47 = vpop.permute.xlu0 %680  ;;  %v616_v17 = vsub.f32 %v532_v42, %v606_v44  ;;  %v649_v42 = vmul.f32 0.5, %v589_v36 }
 0x35f   :  { %420 = vadd.xlane.f32.xlu0 %v419_v46 }
 0x360   :  { %v620_v0 = vmax.f32 %v616_v17, 0.0 }
 0x361   :  { %v658_v2 = vpop.permute.xlu1 %657  ;;  %v1550_v4 = vpop.eup %1152 }
 0x362   :  { %v708_v5 = vadd.f32 %v658_v2, %v572_v48  ;;  %v604_v59 = vpop.permute.xlu0 %603  ;;  %v428_v60 = vsel %vm394_vm0, %v1550_v4, 0.0  ;;  %v668_v25 = vsub.f32 %v572_v48, %v658_v2  ;;  %v644_v29 = vmin.f32 %v620_v0, %v1442_v50 }
 0x363   :  { %v1556_v13 = vadd.f32 %v604_v59, %v531_v8  ;;  %429 = vadd.xlane.f32.xlu0 %v428_v60  ;;  %v615_v34 = vsub.f32 %v531_v8, %v604_v59  ;;  %v574_v2 = vadd.f32 %v1523_v55, %v554_v26  ;;  %v553_v60 = vmul.f32 %v1461_v6, %v384_v30 }
 0x364   :  { %v712_v11 = vmax.f32 %v708_v5, 0.0  ;;  %v672_v9 = vmax.f32 %v668_v25, 0.0 }
 0x365   :  { %v1558_v62 = vpop.eup %1154  ;;  %v610_v20 = vpop.permute.xlu1 %609  ;;  %v619_v35 = vmax.f32 %v615_v34, 0.0  ;;  %v573_v7 = vadd.f32 %v1521_v18, %v553_v60  ;;  %v699_v17 = vmax.f32 %v1556_v13, 0.0 }
 0x366   :  { %v656_v14 = vpop.permute.xlu0 %655  ;;  %v425_v58 = vsel %vm394_vm0, %v1558_v62, 0.0  ;;  %v1563_v3 = vmin.f32 %v712_v11, %v681_v47  ;;  %v618_v22 = vsub.f32 %v534_v21, %v610_v20  ;;  %v692_v39 = vmin.f32 %v672_v9, %v681_v47 }
 0x367   :  { %v707_v31 = vadd.f32 %v656_v14, %v571_v52  ;;  %426 = vadd.xlane.f32.xlu0 %v425_v58  ;;  %v667_v44 = vsub.f32 %v571_v52, %v656_v14  ;;  %v643_v1 = vmin.f32 %v619_v35, %v1440_v49  ;;  %v700_v11 = vmax.f32 %v1545_v45, 0.0 }
 0x368   :  { %v622_v28 = vmax.f32 %v618_v22, 0.0  ;;  %v698_v52 = vadd.f32 %v610_v20, %v534_v21 }
 0x369   :  { %v711_v56 = vmax.f32 %v707_v31, 0.0  ;;  %v671_v46 = vmax.f32 %v667_v44, 0.0  ;;  %v704_v14 = vmin.f32 %v700_v11, %v1442_v50 }
 0x36a   :  { %v646_v53 = vmin.f32 %v622_v28, %v1446_v61  ;;  %v608_v37 = vpop.permute.xlu0 %607  ;;  %v702_v10 = vmax.f32 %v698_v52, 0.0 }
 0x36b   :  { %v1569_v16 = vmin.f32 %v711_v56, %v1527_v27  ;;  %v617_v24 = vsub.f32 %v533_v40, %v608_v37  ;;  %v691_v15 = vmin.f32 %v671_v46, %v1527_v27  ;;  %v697_v19 = vadd.f32 %v608_v37, %v533_v40 }
 0x36c   :  { %v706_v45 = vmin.f32 %v702_v10, %v1446_v61  ;;  %v703_v56 = vmin.f32 %v699_v17, %v1440_v49 }
 0x36d   :  { %v621_v63 = vmax.f32 %v617_v24, 0.0  ;;  %v701_v50 = vmax.f32 %v697_v19, 0.0 }
 0x36f   :  { %661 = vrot.lane.b32.xlu1 %v650_v23, %s1197_s4  ;;  %v645_v12 = vmin.f32 %v621_v63, %v1444_v51  ;;  %v705_v0 = vmin.f32 %v701_v50, %v1444_v51 }
 0x373   :  { %725 = vrot.lane.b32.xlu1 %v644_v29, %s1198_s6 }
 0x377   :  { %729 = vrot.lane.b32.xlu1 %v646_v53, %s1198_s6 }
 0x37b   :  { %741 = vrot.lane.b32.xlu1 %v692_v39, %s1198_s6 }
 0x37d   :  { %659 = vrot.lane.b32.xlu0 %v649_v42, %s1197_s4 }
 0x381   :  { %723 = vrot.lane.b32.xlu0 %v643_v1, %s1198_s6 }
 0x385   :  { %727 = vrot.lane.b32.xlu0 %v645_v12, %s1198_s6 }
 0x389   :  { %739 = vrot.lane.b32.xlu0 %v691_v15, %s1198_s6 }
 0x3eb   :  { %v424_v47 = vpop.xlane.xlu1 %423 }
 0x3ec   :  { %v421_v48 = vpop.xlane.xlu0 %420  ;;  %1156 = vrcp.f32 %v424_v47 }
 0x3ef   :  { %v662_v5 = vpop.permute.xlu1 %661 }
 0x3f0   :  { %v670_v8 = vsub.f32 %v574_v2, %v662_v5  ;;  %v430_v57 = vpop.xlane.xlu0 %429  ;;  %v710_v6 = vadd.f32 %v662_v5, %v574_v2 }
 0x3f1   :  { %1158 = vrcp.f32 %v430_v57 }
 0x3f2   :  { %v674_v59 = vmax.f32 %v670_v8, 0.0  ;;  %v714_v20 = vmax.f32 %v710_v6, 0.0  ;;  %1160 = vrcp.f32 %v421_v48 }
 0x3f3   :  { %v726_v29 = vpop.permute.xlu1 %725 }
 0x3f4   :  { %v694_v54 = vmin.f32 %v674_v59, %v1535_v38  ;;  %v427_v27 = vpop.xlane.xlu0 %426  ;;  %v718_v61 = vmin.f32 %v714_v20, %v1535_v38 }
 0x3f5   :  { %1162 = vrcp.f32 %v427_v27 }
 0x3f6   :  { %745 = vrot.lane.b32.xlu1 %v694_v54, %s1198_s6  ;;  %v1157_v13 = vpop.eup %1156 }
 0x3f7   :  { %v436_v22 = vmul.f32 %v1157_v13, %v1538_v41  ;;  %v730_v30 = vpop.permute.xlu1 %729 }
 0x3f8   :  { %v660_v55 = vpop.permute.xlu0 %659 }
 0x3f9   :  { %v669_v58 = vsub.f32 %v573_v7, %v660_v55  ;;  %v709_v21 = vadd.f32 %v660_v55, %v573_v7 }
 0x3fa   :  { %757 = vrot.lane.b32.xlu1 %v704_v14, %s1199_s20 }
 0x3fb   :  { %v673_v31 = vmax.f32 %v669_v58, 0.0  ;;  %v1159_v23 = vpop.eup %1158  ;;  %v742_v53 = vpop.permute.xlu1 %741 }
 0x3fc   :  { %v438_v49 = vmul.f32 %v1159_v23, %v1550_v4  ;;  %v1161_v25 = vpop.eup %1160  ;;  %v724_v9 = vpop.permute.xlu0 %723 }
 0x3fd   :  { %v693_v18 = vmin.f32 %v673_v31, %v1531_v32  ;;  %v435_v51 = vmul.f32 %v1161_v25, %v1541_v43  ;;  %v800_v43 = vsel %vm394_vm0, %v726_v29, %v742_v53 }
 0x3fe   :  { %761 = vrot.lane.b32.xlu1 %v706_v45, %s1199_s20 }
 0x3ff   :  { %743 = vrot.lane.b32.xlu0 %v693_v18, %s1198_s6  ;;  %v1163_v28 = vpop.eup %1162 }
 0x400   :  { %v437_v41 = vmul.f32 %v1163_v28, %v1558_v62 }
 0x402   :  { %773 = vrot.lane.b32.xlu1 %v1563_v3, %s1199_s20  ;;  %v713_v3 = vmax.f32 %v709_v21, 0.0 }
 0x403   :  { %755 = vrot.lane.b32.xlu0 %v703_v56, %s1199_s20 }
 0x404   :  { %v717_v38 = vmin.f32 %v713_v3, %v1531_v32 }
 0x406   :  { %777 = vrot.lane.b32.xlu1 %v718_v61, %s1199_s20 }
 0x407   :  { %759 = vrot.lane.b32.xlu0 %v705_v0, %s1199_s20 }
 0x40a   :  { %789 = vrot.lane.b32.xlu1 %v436_v22, %s1200_s21 }
 0x40b   :  { %771 = vrot.lane.b32.xlu0 %v1569_v16, %s1199_s20  ;;  %v728_v16 = vpop.permute.xlu0 %727 }
 0x40e   :  { %793 = vrot.lane.b32.xlu1 %v438_v49, %s1200_s21 }
 0x40f   :  { %775 = vrot.lane.b32.xlu0 %v717_v38, %s1199_s20  ;;  %v740_v34 = vpop.permute.xlu0 %739 }
 0x410   :  { %v799_v48 = vsel %vm394_vm0, %v724_v9, %v740_v34 }
 0x413   :  { %787 = vrot.lane.b32.xlu0 %v435_v51, %s1200_s21 }
 0x417   :  { %791 = vrot.lane.b32.xlu0 %v437_v41, %s1200_s21 }
 0x468   :  { %v746_v33 = vpop.permute.xlu1 %745 }
 0x469   :  { %v802_v63 = vsel %vm394_vm0, %v730_v30, %v746_v33 }
 0x46c   :  { %v758_v4 = vpop.permute.xlu1 %757 }
 0x46d   :  { %v805_v62 = vsel %vm803_vm1, %v800_v43, %v758_v4 }
 0x470   :  { %v762_v36 = vpop.permute.xlu1 %761 }
 0x471   :  { %v744_v32 = vpop.permute.xlu0 %743  ;;  %v807_v46 = vsel %vm803_vm1, %v802_v63, %v762_v36 }
 0x472   :  { %v801_v59 = vsel %vm394_vm0, %v728_v16, %v744_v32 }
 0x474   :  { %v774_v37 = vpop.permute.xlu1 %773 }
 0x475   :  { %v756_v39 = vpop.permute.xlu0 %755  ;;  %v810_v24 = vsel %vm808_vm2, %v805_v62, %v774_v37 }
 0x476   :  { %v804_v2 = vsel %vm803_vm1, %v799_v48, %v756_v39 }
 0x478   :  { %v778_v40 = vpop.permute.xlu1 %777 }
 0x479   :  { %v760_v35 = vpop.permute.xlu0 %759  ;;  %v812_v12 = vsel %vm808_vm2, %v807_v46, %v778_v40 }
 0x47a   :  { %v806_v60 = vsel %vm803_vm1, %v801_v59, %v760_v35 }
 0x47c   :  { %v790_v42 = vpop.permute.xlu1 %789 }
 0x47d   :  { %v815_v44 = vsel %vm813_vm3, %v810_v24, %v790_v42  ;;  %v772_v1 = vpop.permute.xlu0 %771 }
 0x47e   :  { %820 = vst.msk [vmem:[%s1660_s9 + $0x8] sm:$0xff] %vm818_vm4, %v815_v44  ;;  %v809_v5 = vsel %vm808_vm2, %v804_v2, %v772_v1 }
 0x480   :  { %v794_v15 = vpop.permute.xlu1 %793 }
 0x481   :  { %v817_v26 = vsel %vm813_vm3, %v812_v12, %v794_v15  ;;  %v776_v47 = vpop.permute.xlu0 %775 }
 0x482   :  { %822 = vst.msk [vmem:[%s1660_s9 + $0x18] sm:$0xff] %vm818_vm4, %v817_v26  ;;  %v811_v11 = vsel %vm808_vm2, %v806_v60, %v776_v47 }
 0x485   :  { %v788_v8 = vpop.permute.xlu0 %787 }
 0x486   :  { %v814_v57 = vsel %vm813_vm3, %v809_v5, %v788_v8 }
 0x487   :  { %819 = vst.msk [vmem:[%s1660_s9] sm:$0xff] %vm818_vm4, %v814_v57 }
 0x489   :  { %v792_v52 = vpop.permute.xlu0 %791 }
 0x48a   :  { %v816_v54 = vsel %vm813_vm3, %v811_v11, %v792_v52 }
 0x48b   :  { %821 = vst.msk [vmem:[%s1660_s9 + $0x10] sm:$0xff] %vm818_vm4, %v816_v54 }
 0x48c   :  { %827 = vsyncpa [#allocation3], 1 }

</bundles_post_ra>
